<compile_context>
chip_gen: v7x
topology: tpu7x:2x2x1
jax: 0.10.0
libtpu: 0.0.40
codegen_flags: <defaults>
</compile_context>

<pallas_src>
import functools

import jax
import jax.numpy as jnp
from jax import lax
from jax.experimental import pallas as pl
from jax.experimental.pallas import tpu as pltpu

OUT_LANES = 128  # fc output padded to full lane width -> unmasked vst


def _lstm_net_kernel(x_ref, wihb_ref, whh_ref, wfcb_ref, out_ref, *,
                     seq_len, hidden_dim, batch_pad):
    T, H, Bp = seq_len, hidden_dim, batch_pad

    # ---- Parallel part, hoisted out of the recurrence ----------------------
    # x carries an appended ones-column and wihb carries (b_ih + b_hh) as its
    # last row, so this single (T*Bp, F+1) @ (F+1, 4H) MXU matmul already
    # includes the bias.  Result stays a traced value (no VMEM scratch
    # round-trip, no store->load dependency before step 0).
    xw = jnp.dot(x_ref[...], wihb_ref[...],
                 preferred_element_type=jnp.float32)            # (T*Bp, 4H) f32

    whh = whh_ref[...]                                          # (H, 4H) bf16, resident

    # Gate layout along lanes: [ i | f | g | o ], each H wide.
    # One transcendental per step:  tanh(x) = 2*sigmoid(2x) - 1, so with
    #   s = 2 on g lanes, 1 elsewhere   and   c = 1 - s,
    #   act = s * sigmoid(s * z) + c
    # gives sigmoid on i/f/o lanes and tanh on g lanes with a single EUP pass.
    # Constants hoisted (JAX does not CSE broadcast_in_dim / iota).
    lane = lax.broadcasted_iota(jnp.int32, (Bp, 4 * H), 1)
    is_g = (lane >= 2 * H) & (lane < 3 * H)
    g_scale = jnp.where(is_g, jnp.float32(2.0), jnp.float32(1.0))
    g_shift = jnp.float32(1.0) - g_scale

    h = jnp.zeros((Bp, H), jnp.float32)   # init_hidden(): zeros
    c = jnp.zeros((Bp, H), jnp.float32)

    # Fully unrolled serial recurrence.  xw[t*Bp:(t+1)*Bp] is a static,
    # sublane-tile-aligned slice (Bp is a multiple of 8).  Only the truly
    # sequential work lives here: one bf16 MXU push, one EUP sigmoid, one EUP
    # tanh(c), and a handful of VPU ops per step.
    for t in range(T):
        z = xw[t * Bp:(t + 1) * Bp, :] + jnp.dot(
            h.astype(jnp.bfloat16), whh, preferred_element_type=jnp.float32)
        act = g_scale * jax.nn.sigmoid(g_scale * z) + g_shift
        i_g = act[:, 0 * H:1 * H]
        f_g = act[:, 1 * H:2 * H]
        g_g = act[:, 2 * H:3 * H]
        o_g = act[:, 3 * H:4 * H]
        c = f_g * c + i_g * g_g
        h = o_g * jnp.tanh(c)

    # fc(x[-1]) on the final hidden state.  W_fc / b_fc are packed into one
    # lane-128-padded array; real 6 columns and real batch rows are sliced
    # off in the wrapper.
    wfcb = wfcb_ref[...]                                        # (H+1, 128) f32
    out_ref[...] = (jnp.dot(h, wfcb[:H, :], preferred_element_type=jnp.float32)
                    + wfcb[H:, :]).astype(out_ref.dtype)


def pack_lstm_params(w_ih, w_hh, b_ih, b_hh, w_fc, b_fc, *, out_lanes=OUT_LANES):
    """One-time param prep: pack/transpose/cast weights for the kernel."""
    wihb = jnp.concatenate(
        [w_ih.astype(jnp.float32), (b_ih + b_hh)[None, :].astype(jnp.float32)],
        axis=0)                                                  # (F+1, 4H)
    whh_bf16 = w_hh.astype(jnp.bfloat16)                         # (H, 4H)
    wfcb = jnp.concatenate(
        [w_fc.astype(jnp.float32), b_fc[None, :].astype(jnp.float32)], axis=0)
    wfcb = jnp.pad(wfcb, ((0, 0), (0, out_lanes - wfcb.shape[1])))  # (H+1, 128)
    return wihb, whh_bf16, wfcb


@functools.partial(jax.jit, static_argnames=("batch_size", "num_feature", "num_out"))
def lstm_net_forward(x, wihb, whh_bf16, wfcb, *, batch_size, num_feature, num_out=6):
    """Equivalent of LSTMNet.forward(x) with zero initial hidden state."""
    # x = x.view(-1, batch_size, num_feature)
    x = x.reshape(-1, batch_size, num_feature).astype(jnp.float32)
    T, B, F = x.shape
    H = whh_bf16.shape[0]

    # Pad batch up to the f32 sublane tile (8) so every vreg / MXU row is
    # dense, and append a ones-column so the hoisted projection picks up the
    # bias stored as wihb's last row.
    Bp = max(8, -(-B // 8) * 8)
    x_pad = jnp.pad(x, ((0, 0), (0, Bp - B), (0, 0)))
    x_flat = x_pad.reshape(T * Bp, F)
    x_aug = jnp.concatenate(
        [x_flat, jnp.ones((T * Bp, 1), jnp.float32)], axis=1)   # (T*Bp, F+1)

    kernel = functools.partial(_lstm_net_kernel,
                               seq_len=T, hidden_dim=H, batch_pad=Bp)

    out_pad = pl.pallas_call(
        kernel,
        out_shape=jax.ShapeDtypeStruct((Bp, OUT_LANES), jnp.float32),
        # Single invocation (no grid): every operand is a whole-array VMEM
        # block.  4 inputs (was 6) to cut per-operand DMA / launch overhead.
        in_specs=[pl.BlockSpec(memory_space=pltpu.MemorySpace.VMEM)] * 4,
        out_specs=pl.BlockSpec(memory_space=pltpu.MemorySpace.VMEM),
        compiler_params=pltpu.CompilerParams(
            # Footprint is well under 1 MiB; 32 MiB scoped limit is safe on
            # v7x's 64 MiB VMEM too.  If T scales up, xw grows as (T*Bp, 4H)
            # and should be re-checked (or streamed) before raising this.
            vmem_limit_bytes=32 * 1024 * 1024),
    )(x_aug, wihb, whh_bf16, wfcb)

    return out_pad[:B, :num_out]


def _reference_forward(x, w_ih, w_hh, b_ih, b_hh, w_fc, b_fc, batch_size, num_feature):
    """Pure-JAX f32 reference mirroring torch.nn.LSTM (gate order i,f,g,o) + Linear."""
    x = x.reshape(-1, batch_size, num_feature).astype(jnp.float32)
    H = w_hh.shape[0]
    B = batch_size
    b = b_ih + b_hh

    def step(carry, x_t):
        h, c = carry
        z = x_t @ w_ih + h @ w_hh + b
        i = jax.nn.sigmoid(z[:, 0 * H:1 * H])
        f = jax.nn.sigmoid(z[:, 1 * H:2 * H])
        g = jnp.tanh(z[:, 2 * H:3 * H])
        o = jax.nn.sigmoid(z[:, 3 * H:4 * H])
        c = f * c + i * g
        h = o * jnp.tanh(c)
        return (h, c), None

    h0 = jnp.zeros((B, H), jnp.float32)
    c0 = jnp.zeros((B, H), jnp.float32)
    (h_last, _), _ = lax.scan(step, (h0, c0), x)
    return h_last @ w_fc + b_fc


if __name__ == "__main__":
    # Small shapes consistent with the module's forward.
    SEQ_LEN = 8
    BATCH = 2
    NUM_FEATURE = 16
    HIDDEN = 32

    key = jax.random.PRNGKey(0)
    k_x, k1, k2, k3, k4, k5, k6 = jax.random.split(key, 7)

    # Deterministic params, PyTorch-style uniform(-1/sqrt(H), 1/sqrt(H)).
    bound = 1.0 / (HIDDEN ** 0.5)
    w_ih = jax.random.uniform(k1, (NUM_FEATURE, 4 * HIDDEN), jnp.float32, -bound, bound)
    w_hh = jax.random.uniform(k2, (HIDDEN, 4 * HIDDEN), jnp.float32, -bound, bound)
    b_ih = jax.random.uniform(k3, (4 * HIDDEN,), jnp.float32, -bound, bound)
    b_hh = jax.random.uniform(k4, (4 * HIDDEN,), jnp.float32, -bound, bound)
    w_fc = jax.random.uniform(k5, (HIDDEN, 6), jnp.float32, -bound, bound)
    b_fc = jax.random.uniform(k6, (6,), jnp.float32, -bound, bound)

    # Input as handed to LSTMNet.forward (flattened; forward .view's it).
    x = jax.random.normal(k_x, (SEQ_LEN * BATCH, NUM_FEATURE), jnp.float32)

    # One-time param packing (transpose/concat/cast).
    wihb, whh_bf16, wfcb = pack_lstm_params(w_ih, w_hh, b_ih, b_hh, w_fc, b_fc)

    # TODO(synk): nn.LSTM(dropout=0.5) with num_layers=1 applies no dropout at
    # all, so it is intentionally omitted.

    out = lstm_net_forward(x, wihb, whh_bf16, wfcb,
                           batch_size=BATCH, num_feature=NUM_FEATURE, num_out=6)
    out = jax.block_until_ready(out)

    ref = _reference_forward(x, w_ih, w_hh, b_ih, b_hh, w_fc, b_fc,
                             BATCH, NUM_FEATURE)
    assert out.shape == (BATCH, 6)
    # bf16 recurrent-matmul operands -> tolerance loosened vs the old f32 path.
    assert jnp.allclose(out, ref, atol=5e-2, rtol=5e-2), (out, ref)

    print("KERNEL_OK")
</pallas_src>

<mosaic_0001>
module attributes {stable_mosaic.version = 11 : i64} {
  func.func @_lstm_net_kernel(%arg0: memref<64x17xf32, #tpu.memory_space<vmem>>, %arg1: memref<17x128xf32, #tpu.memory_space<vmem>>, %arg2: memref<32x128xbf16, #tpu.memory_space<vmem>>, %arg3: memref<33x128xf32, #tpu.memory_space<vmem>>, %arg4: memref<8x128xf32, #tpu.memory_space<vmem>>) attributes {dimension_semantics = [], scalar_prefetch = 0 : i64, scratch_operands = 0 : i64, tpu.core_type = #tpu.core_type<tc>} {
    %c0 = arith.constant 0 : index
    %c0_0 = arith.constant 0 : index
    %0 = vector.load %arg0[%c0, %c0_0] : memref<64x17xf32, #tpu.memory_space<vmem>>, vector<64x17xf32>
    %c0_1 = arith.constant 0 : index
    %c0_2 = arith.constant 0 : index
    %1 = vector.load %arg1[%c0_1, %c0_2] : memref<17x128xf32, #tpu.memory_space<vmem>>, vector<17x128xf32>
    %cst = arith.constant dense<0.000000e+00> : vector<64x128xf32>
    %2 = tpu.matmul %0, %1, %cst {dimension_numbers = #tpu.dot_dimension_numbers<[1], [0], [0], [1], [0, 0, 1, 1], [], []>} : vector<64x17xf32>, vector<17x128xf32>, vector<64x128xf32> -> vector<64x128xf32>
    %c0_3 = arith.constant 0 : index
    %c0_4 = arith.constant 0 : index
    %3 = vector.load %arg2[%c0_3, %c0_4] : memref<32x128xbf16, #tpu.memory_space<vmem>>, vector<32x128xbf16>
    %4 = tpu.iota {dimensions = array<i32: 1>} : vector<8x128xi32>
    %c64_i32 = arith.constant 64 : i32
    %5 = vector.broadcast %c64_i32 : i32 to vector<8x128xi32>
    %6 = arith.cmpi sge, %4, %5 : vector<8x128xi32>
    %c96_i32 = arith.constant 96 : i32
    %7 = vector.broadcast %c96_i32 : i32 to vector<8x128xi32>
    %8 = arith.cmpi slt, %4, %7 : vector<8x128xi32>
    %9 = arith.andi %6, %8 : vector<8x128xi1>
    %cst_5 = arith.constant 2.000000e+00 : f32
    %cst_6 = arith.constant 1.000000e+00 : f32
    %10 = vector.broadcast %cst_5 : f32 to vector<8x128xf32>
    %11 = vector.broadcast %cst_6 : f32 to vector<8x128xf32>
    %12 = arith.select %9, %10, %11 : vector<8x128xi1>, vector<8x128xf32>
    %cst_7 = arith.constant 1.000000e+00 : f32
    %13 = vector.broadcast %cst_7 : f32 to vector<8x128xf32>
    %14 = arith.subf %13, %12 : vector<8x128xf32>
    %cst_8 = arith.constant 0.000000e+00 : f32
    %15 = vector.broadcast %cst_8 : f32 to vector<8x32xf32>
    %cst_9 = arith.constant 0.000000e+00 : f32
    %16 = vector.broadcast %cst_9 : f32 to vector<8x32xf32>
    %17 = vector.extract_strided_slice %2 {offsets = [0, 0], sizes = [8, 128], strides = [1, 1]} : vector<64x128xf32> to vector<8x128xf32>
    %18 = arith.truncf %15 : vector<8x32xf32> to vector<8x32xbf16>
    %cst_10 = arith.constant dense<0.000000e+00> : vector<8x128xf32>
    %19 = tpu.matmul %18, %3, %cst_10 {dimension_numbers = #tpu.dot_dimension_numbers<[1], [0], [0], [1], [0, 0, 1, 1], [], []>} : vector<8x32xbf16>, vector<32x128xbf16>, vector<8x128xf32> -> vector<8x128xf32>
    %20 = arith.addf %17, %19 : vector<8x128xf32>
    %21 = arith.mulf %12, %20 : vector<8x128xf32>
    %22 = arith.negf %21 : vector<8x128xf32>
    %23 = math.exp %22 : vector<8x128xf32>
    %cst_11 = arith.constant 1.000000e+00 : f32
    %24 = vector.broadcast %cst_11 : f32 to vector<8x128xf32>
    %25 = arith.addf %24, %23 : vector<8x128xf32>
    %26 = arith.divf %24, %25 : vector<8x128xf32>
    %27 = arith.mulf %12, %26 : vector<8x128xf32>
    %28 = arith.addf %27, %14 : vector<8x128xf32>
    %29 = vector.extract_strided_slice %28 {offsets = [0, 0], sizes = [8, 32], strides = [1, 1]} : vector<8x128xf32> to vector<8x32xf32>
    %30 = vector.extract_strided_slice %28 {offsets = [0, 32], sizes = [8, 32], strides = [1, 1]} : vector<8x128xf32> to vector<8x32xf32>
    %31 = vector.extract_strided_slice %28 {offsets = [0, 64], sizes = [8, 32], strides = [1, 1]} : vector<8x128xf32> to vector<8x32xf32>
    %32 = vector.extract_strided_slice %28 {offsets = [0, 96], sizes = [8, 32], strides = [1, 1]} : vector<8x128xf32> to vector<8x32xf32>
    %33 = arith.mulf %30, %16 : vector<8x32xf32>
    %34 = arith.mulf %29, %31 : vector<8x32xf32>
    %35 = arith.addf %33, %34 : vector<8x32xf32>
    %36 = math.tanh %35 : vector<8x32xf32>
    %37 = arith.mulf %32, %36 : vector<8x32xf32>
    %38 = vector.extract_strided_slice %2 {offsets = [8, 0], sizes = [8, 128], strides = [1, 1]} : vector<64x128xf32> to vector<8x128xf32>
    %39 = arith.truncf %37 : vector<8x32xf32> to vector<8x32xbf16>
    %cst_12 = arith.constant dense<0.000000e+00> : vector<8x128xf32>
    %40 = tpu.matmul %39, %3, %cst_12 {dimension_numbers = #tpu.dot_dimension_numbers<[1], [0], [0], [1], [0, 0, 1, 1], [], []>} : vector<8x32xbf16>, vector<32x128xbf16>, vector<8x128xf32> -> vector<8x128xf32>
    %41 = arith.addf %38, %40 : vector<8x128xf32>
    %42 = arith.mulf %12, %41 : vector<8x128xf32>
    %43 = arith.negf %42 : vector<8x128xf32>
    %44 = math.exp %43 : vector<8x128xf32>
    %cst_13 = arith.constant 1.000000e+00 : f32
    %45 = vector.broadcast %cst_13 : f32 to vector<8x128xf32>
    %46 = arith.addf %45, %44 : vector<8x128xf32>
    %47 = arith.divf %45, %46 : vector<8x128xf32>
    %48 = arith.mulf %12, %47 : vector<8x128xf32>
    %49 = arith.addf %48, %14 : vector<8x128xf32>
    %50 = vector.extract_strided_slice %49 {offsets = [0, 0], sizes = [8, 32], strides = [1, 1]} : vector<8x128xf32> to vector<8x32xf32>
    %51 = vector.extract_strided_slice %49 {offsets = [0, 32], sizes = [8, 32], strides = [1, 1]} : vector<8x128xf32> to vector<8x32xf32>
    %52 = vector.extract_strided_slice %49 {offsets = [0, 64], sizes = [8, 32], strides = [1, 1]} : vector<8x128xf32> to vector<8x32xf32>
    %53 = vector.extract_strided_slice %49 {offsets = [0, 96], sizes = [8, 32], strides = [1, 1]} : vector<8x128xf32> to vector<8x32xf32>
    %54 = arith.mulf %51, %35 : vector<8x32xf32>
    %55 = arith.mulf %50, %52 : vector<8x32xf32>
    %56 = arith.addf %54, %55 : vector<8x32xf32>
    %57 = math.tanh %56 : vector<8x32xf32>
    %58 = arith.mulf %53, %57 : vector<8x32xf32>
    %59 = vector.extract_strided_slice %2 {offsets = [16, 0], sizes = [8, 128], strides = [1, 1]} : vector<64x128xf32> to vector<8x128xf32>
    %60 = arith.truncf %58 : vector<8x32xf32> to vector<8x32xbf16>
    %cst_14 = arith.constant dense<0.000000e+00> : vector<8x128xf32>
    %61 = tpu.matmul %60, %3, %cst_14 {dimension_numbers = #tpu.dot_dimension_numbers<[1], [0], [0], [1], [0, 0, 1, 1], [], []>} : vector<8x32xbf16>, vector<32x128xbf16>, vector<8x128xf32> -> vector<8x128xf32>
    %62 = arith.addf %59, %61 : vector<8x128xf32>
    %63 = arith.mulf %12, %62 : vector<8x128xf32>
    %64 = arith.negf %63 : vector<8x128xf32>
    %65 = math.exp %64 : vector<8x128xf32>
    %cst_15 = arith.constant 1.000000e+00 : f32
    %66 = vector.broadcast %cst_15 : f32 to vector<8x128xf32>
    %67 = arith.addf %66, %65 : vector<8x128xf32>
    %68 = arith.divf %66, %67 : vector<8x128xf32>
    %69 = arith.mulf %12, %68 : vector<8x128xf32>
    %70 = arith.addf %69, %14 : vector<8x128xf32>
    %71 = vector.extract_strided_slice %70 {offsets = [0, 0], sizes = [8, 32], strides = [1, 1]} : vector<8x128xf32> to vector<8x32xf32>
    %72 = vector.extract_strided_slice %70 {offsets = [0, 32], sizes = [8, 32], strides = [1, 1]} : vector<8x128xf32> to vector<8x32xf32>
    %73 = vector.extract_strided_slice %70 {offsets = [0, 64], sizes = [8, 32], strides = [1, 1]} : vector<8x128xf32> to vector<8x32xf32>
    %74 = vector.extract_strided_slice %70 {offsets = [0, 96], sizes = [8, 32], strides = [1, 1]} : vector<8x128xf32> to vector<8x32xf32>
    %75 = arith.mulf %72, %56 : vector<8x32xf32>
    %76 = arith.mulf %71, %73 : vector<8x32xf32>
    %77 = arith.addf %75, %76 : vector<8x32xf32>
    %78 = math.tanh %77 : vector<8x32xf32>
    %79 = arith.mulf %74, %78 : vector<8x32xf32>
    %80 = vector.extract_strided_slice %2 {offsets = [24, 0], sizes = [8, 128], strides = [1, 1]} : vector<64x128xf32> to vector<8x128xf32>
    %81 = arith.truncf %79 : vector<8x32xf32> to vector<8x32xbf16>
    %cst_16 = arith.constant dense<0.000000e+00> : vector<8x128xf32>
    %82 = tpu.matmul %81, %3, %cst_16 {dimension_numbers = #tpu.dot_dimension_numbers<[1], [0], [0], [1], [0, 0, 1, 1], [], []>} : vector<8x32xbf16>, vector<32x128xbf16>, vector<8x128xf32> -> vector<8x128xf32>
    %83 = arith.addf %80, %82 : vector<8x128xf32>
    %84 = arith.mulf %12, %83 : vector<8x128xf32>
    %85 = arith.negf %84 : vector<8x128xf32>
    %86 = math.exp %85 : vector<8x128xf32>
    %cst_17 = arith.constant 1.000000e+00 : f32
    %87 = vector.broadcast %cst_17 : f32 to vector<8x128xf32>
    %88 = arith.addf %87, %86 : vector<8x128xf32>
    %89 = arith.divf %87, %88 : vector<8x128xf32>
    %90 = arith.mulf %12, %89 : vector<8x128xf32>
    %91 = arith.addf %90, %14 : vector<8x128xf32>
    %92 = vector.extract_strided_slice %91 {offsets = [0, 0], sizes = [8, 32], strides = [1, 1]} : vector<8x128xf32> to vector<8x32xf32>
    %93 = vector.extract_strided_slice %91 {offsets = [0, 32], sizes = [8, 32], strides = [1, 1]} : vector<8x128xf32> to vector<8x32xf32>
    %94 = vector.extract_strided_slice %91 {offsets = [0, 64], sizes = [8, 32], strides = [1, 1]} : vector<8x128xf32> to vector<8x32xf32>
    %95 = vector.extract_strided_slice %91 {offsets = [0, 96], sizes = [8, 32], strides = [1, 1]} : vector<8x128xf32> to vector<8x32xf32>
    %96 = arith.mulf %93, %77 : vector<8x32xf32>
    %97 = arith.mulf %92, %94 : vector<8x32xf32>
    %98 = arith.addf %96, %97 : vector<8x32xf32>
    %99 = math.tanh %98 : vector<8x32xf32>
    %100 = arith.mulf %95, %99 : vector<8x32xf32>
    %101 = vector.extract_strided_slice %2 {offsets = [32, 0], sizes = [8, 128], strides = [1, 1]} : vector<64x128xf32> to vector<8x128xf32>
    %102 = arith.truncf %100 : vector<8x32xf32> to vector<8x32xbf16>
    %cst_18 = arith.constant dense<0.000000e+00> : vector<8x128xf32>
    %103 = tpu.matmul %102, %3, %cst_18 {dimension_numbers = #tpu.dot_dimension_numbers<[1], [0], [0], [1], [0, 0, 1, 1], [], []>} : vector<8x32xbf16>, vector<32x128xbf16>, vector<8x128xf32> -> vector<8x128xf32>
    %104 = arith.addf %101, %103 : vector<8x128xf32>
    %105 = arith.mulf %12, %104 : vector<8x128xf32>
    %106 = arith.negf %105 : vector<8x128xf32>
    %107 = math.exp %106 : vector<8x128xf32>
    %cst_19 = arith.constant 1.000000e+00 : f32
    %108 = vector.broadcast %cst_19 : f32 to vector<8x128xf32>
    %109 = arith.addf %108, %107 : vector<8x128xf32>
    %110 = arith.divf %108, %109 : vector<8x128xf32>
    %111 = arith.mulf %12, %110 : vector<8x128xf32>
    %112 = arith.addf %111, %14 : vector<8x128xf32>
    %113 = vector.extract_strided_slice %112 {offsets = [0, 0], sizes = [8, 32], strides = [1, 1]} : vector<8x128xf32> to vector<8x32xf32>
    %114 = vector.extract_strided_slice %112 {offsets = [0, 32], sizes = [8, 32], strides = [1, 1]} : vector<8x128xf32> to vector<8x32xf32>
    %115 = vector.extract_strided_slice %112 {offsets = [0, 64], sizes = [8, 32], strides = [1, 1]} : vector<8x128xf32> to vector<8x32xf32>
    %116 = vector.extract_strided_slice %112 {offsets = [0, 96], sizes = [8, 32], strides = [1, 1]} : vector<8x128xf32> to vector<8x32xf32>
    %117 = arith.mulf %114, %98 : vector<8x32xf32>
    %118 = arith.mulf %113, %115 : vector<8x32xf32>
    %119 = arith.addf %117, %118 : vector<8x32xf32>
    %120 = math.tanh %119 : vector<8x32xf32>
    %121 = arith.mulf %116, %120 : vector<8x32xf32>
    %122 = vector.extract_strided_slice %2 {offsets = [40, 0], sizes = [8, 128], strides = [1, 1]} : vector<64x128xf32> to vector<8x128xf32>
    %123 = arith.truncf %121 : vector<8x32xf32> to vector<8x32xbf16>
    %cst_20 = arith.constant dense<0.000000e+00> : vector<8x128xf32>
    %124 = tpu.matmul %123, %3, %cst_20 {dimension_numbers = #tpu.dot_dimension_numbers<[1], [0], [0], [1], [0, 0, 1, 1], [], []>} : vector<8x32xbf16>, vector<32x128xbf16>, vector<8x128xf32> -> vector<8x128xf32>
    %125 = arith.addf %122, %124 : vector<8x128xf32>
    %126 = arith.mulf %12, %125 : vector<8x128xf32>
    %127 = arith.negf %126 : vector<8x128xf32>
    %128 = math.exp %127 : vector<8x128xf32>
    %cst_21 = arith.constant 1.000000e+00 : f32
    %129 = vector.broadcast %cst_21 : f32 to vector<8x128xf32>
    %130 = arith.addf %129, %128 : vector<8x128xf32>
    %131 = arith.divf %129, %130 : vector<8x128xf32>
    %132 = arith.mulf %12, %131 : vector<8x128xf32>
    %133 = arith.addf %132, %14 : vector<8x128xf32>
    %134 = vector.extract_strided_slice %133 {offsets = [0, 0], sizes = [8, 32], strides = [1, 1]} : vector<8x128xf32> to vector<8x32xf32>
    %135 = vector.extract_strided_slice %133 {offsets = [0, 32], sizes = [8, 32], strides = [1, 1]} : vector<8x128xf32> to vector<8x32xf32>
    %136 = vector.extract_strided_slice %133 {offsets = [0, 64], sizes = [8, 32], strides = [1, 1]} : vector<8x128xf32> to vector<8x32xf32>
    %137 = vector.extract_strided_slice %133 {offsets = [0, 96], sizes = [8, 32], strides = [1, 1]} : vector<8x128xf32> to vector<8x32xf32>
    %138 = arith.mulf %135, %119 : vector<8x32xf32>
    %139 = arith.mulf %134, %136 : vector<8x32xf32>
    %140 = arith.addf %138, %139 : vector<8x32xf32>
    %141 = math.tanh %140 : vector<8x32xf32>
    %142 = arith.mulf %137, %141 : vector<8x32xf32>
    %143 = vector.extract_strided_slice %2 {offsets = [48, 0], sizes = [8, 128], strides = [1, 1]} : vector<64x128xf32> to vector<8x128xf32>
    %144 = arith.truncf %142 : vector<8x32xf32> to vector<8x32xbf16>
    %cst_22 = arith.constant dense<0.000000e+00> : vector<8x128xf32>
    %145 = tpu.matmul %144, %3, %cst_22 {dimension_numbers = #tpu.dot_dimension_numbers<[1], [0], [0], [1], [0, 0, 1, 1], [], []>} : vector<8x32xbf16>, vector<32x128xbf16>, vector<8x128xf32> -> vector<8x128xf32>
    %146 = arith.addf %143, %145 : vector<8x128xf32>
    %147 = arith.mulf %12, %146 : vector<8x128xf32>
    %148 = arith.negf %147 : vector<8x128xf32>
    %149 = math.exp %148 : vector<8x128xf32>
    %cst_23 = arith.constant 1.000000e+00 : f32
    %150 = vector.broadcast %cst_23 : f32 to vector<8x128xf32>
    %151 = arith.addf %150, %149 : vector<8x128xf32>
    %152 = arith.divf %150, %151 : vector<8x128xf32>
    %153 = arith.mulf %12, %152 : vector<8x128xf32>
    %154 = arith.addf %153, %14 : vector<8x128xf32>
    %155 = vector.extract_strided_slice %154 {offsets = [0, 0], sizes = [8, 32], strides = [1, 1]} : vector<8x128xf32> to vector<8x32xf32>
    %156 = vector.extract_strided_slice %154 {offsets = [0, 32], sizes = [8, 32], strides = [1, 1]} : vector<8x128xf32> to vector<8x32xf32>
    %157 = vector.extract_strided_slice %154 {offsets = [0, 64], sizes = [8, 32], strides = [1, 1]} : vector<8x128xf32> to vector<8x32xf32>
    %158 = vector.extract_strided_slice %154 {offsets = [0, 96], sizes = [8, 32], strides = [1, 1]} : vector<8x128xf32> to vector<8x32xf32>
    %159 = arith.mulf %156, %140 : vector<8x32xf32>
    %160 = arith.mulf %155, %157 : vector<8x32xf32>
    %161 = arith.addf %159, %160 : vector<8x32xf32>
    %162 = math.tanh %161 : vector<8x32xf32>
    %163 = arith.mulf %158, %162 : vector<8x32xf32>
    %164 = vector.extract_strided_slice %2 {offsets = [56, 0], sizes = [8, 128], strides = [1, 1]} : vector<64x128xf32> to vector<8x128xf32>
    %165 = arith.truncf %163 : vector<8x32xf32> to vector<8x32xbf16>
    %cst_24 = arith.constant dense<0.000000e+00> : vector<8x128xf32>
    %166 = tpu.matmul %165, %3, %cst_24 {dimension_numbers = #tpu.dot_dimension_numbers<[1], [0], [0], [1], [0, 0, 1, 1], [], []>} : vector<8x32xbf16>, vector<32x128xbf16>, vector<8x128xf32> -> vector<8x128xf32>
    %167 = arith.addf %164, %166 : vector<8x128xf32>
    %168 = arith.mulf %12, %167 : vector<8x128xf32>
    %169 = arith.negf %168 : vector<8x128xf32>
    %170 = math.exp %169 : vector<8x128xf32>
    %cst_25 = arith.constant 1.000000e+00 : f32
    %171 = vector.broadcast %cst_25 : f32 to vector<8x128xf32>
    %172 = arith.addf %171, %170 : vector<8x128xf32>
    %173 = arith.divf %171, %172 : vector<8x128xf32>
    %174 = arith.mulf %12, %173 : vector<8x128xf32>
    %175 = arith.addf %174, %14 : vector<8x128xf32>
    %176 = vector.extract_strided_slice %175 {offsets = [0, 0], sizes = [8, 32], strides = [1, 1]} : vector<8x128xf32> to vector<8x32xf32>
    %177 = vector.extract_strided_slice %175 {offsets = [0, 32], sizes = [8, 32], strides = [1, 1]} : vector<8x128xf32> to vector<8x32xf32>
    %178 = vector.extract_strided_slice %175 {offsets = [0, 64], sizes = [8, 32], strides = [1, 1]} : vector<8x128xf32> to vector<8x32xf32>
    %179 = vector.extract_strided_slice %175 {offsets = [0, 96], sizes = [8, 32], strides = [1, 1]} : vector<8x128xf32> to vector<8x32xf32>
    %180 = arith.mulf %177, %161 : vector<8x32xf32>
    %181 = arith.mulf %176, %178 : vector<8x32xf32>
    %182 = arith.addf %180, %181 : vector<8x32xf32>
    %183 = math.tanh %182 : vector<8x32xf32>
    %184 = arith.mulf %179, %183 : vector<8x32xf32>
    %c0_26 = arith.constant 0 : index
    %c0_27 = arith.constant 0 : index
    %185 = vector.load %arg3[%c0_26, %c0_27] : memref<33x128xf32, #tpu.memory_space<vmem>>, vector<33x128xf32>
    %186 = vector.extract_strided_slice %185 {offsets = [0, 0], sizes = [32, 128], strides = [1, 1]} : vector<33x128xf32> to vector<32x128xf32>
    %cst_28 = arith.constant dense<0.000000e+00> : vector<8x128xf32>
    %187 = tpu.matmul %184, %186, %cst_28 {dimension_numbers = #tpu.dot_dimension_numbers<[1], [0], [0], [1], [0, 0, 1, 1], [], []>} : vector<8x32xf32>, vector<32x128xf32>, vector<8x128xf32> -> vector<8x128xf32>
    %188 = vector.extract_strided_slice %185 {offsets = [32, 0], sizes = [1, 128], strides = [1, 1]} : vector<33x128xf32> to vector<1x128xf32>
    %189 = vector.broadcast %188 : vector<1x128xf32> to vector<8x128xf32>
    %190 = arith.addf %187, %189 : vector<8x128xf32>
    %c0_29 = arith.constant 0 : index
    %c0_30 = arith.constant 0 : index
    %191 = vector.load %arg4[%c0_29, %c0_30] : memref<8x128xf32, #tpu.memory_space<vmem>>, vector<8x128xf32>
    tpu.vector_store %arg4[%c0_29, %c0_30], %190 {strides = array<i32>} : memref<8x128xf32, #tpu.memory_space<vmem>>, vector<8x128xf32>,
    return
  }
}

</mosaic_0001>

<bundles_post_ra>
// kernel: lstm_net_forward.1
= control target key start
LH: loop header
LB: loop body
LE: loop exit
PB: predicated region body
PF: predicated region fallthrough
CT: control target
= control target key end

     0   :  { %v1092_v0 = vmov 0.0   ;;  %vm1093_vm0 = vmmov 0   ;;  %vm54_vm1 = vcmask 1040384   ;;  %vm29_vm2 = vcmask 138240   ;;  %s1097_s28 = smov 32   ;;  %s1324_s1 = inlined_call_operand.vmem [shape: f32[17,128], index: 1, kind: input, shape index: {}]   ;;  %s1325_s2 = inlined_call_operand.vmem [shape: bf16[32,128], index: 2, kind: input, shape index: {}]   ;;  %s1326_s0 = inlined_call_operand.vmem [shape: f32[64,17], index: 0, kind: input, shape index: {}]   ;;  %s1327_s3 = inlined_call_operand.vmem [shape: f32[33,128], index: 3, kind: input, shape index: {}]   ;;  %s1328_s4 = inlined_call_operand.vmem [shape: f32[8,128], index: 4, kind: output, shape index: {}]  }
   0x1   :  { %950 = vmatprep.subr.bf16.mxu1 %v1092_v0  ;;  %v26_v1 = vld [vmem:[%s1324_s1] sm:$0xff]  ;;  %v27_v2 = vld [vmem:[%s1324_s1 + $0x8] sm:$0xff]  ;;  %954 = vmatprep.mubr.msk.bf16.mxu1 %vm1093_vm0, %v1092_v0  ;;  %v28_v5 = vld [vmem:[%s1324_s1 + $0x10] sm:$0x1]  ;;  %v1094_v9 = vmov 0   ;;  %v167_v10 = vlaneseq  ;;  %v1095_v14 = vmov 1.0  }
   0x2   :  { %v1025_v3 = vpack.c.bf16 %v27_v2, %v26_v1  ;;  %v1136_v4 = vld [vmem:[%s1325_s2] sm:$0xff]   ;;  %v1145_v6 = vld [vmem:[%s1325_s2 + $0x8] sm:$0xff]   ;;  %s1096_s2 = smov 64   ;;  %vm186_vm6 = vcmask 261120   ;;  %v20_v56 = vld [vmem:[%s1326_s0 + $0x10] sm:$0xff] }
   0x3   :  { %951 = vmatpush3.bf16.msra.mxu1 %v1136_v4  ;;  %v18_v7 = vld [vmem:[%s1326_s0] sm:$0xff]  ;;  %v19_v8 = vld [vmem:[%s1326_s0 + $0x8] sm:$0xff]  ;;  %v168_v11 = vand.u32 127, %v167_v10  ;;  %v21_v57 = vld [vmem:[%s1326_s0 + $0x18] sm:$0xff] }
   0x4   :  { %1026 = vmatprep.subr.bf16.mxu0 %v1025_v3  ;;  %952 = vmatprep.subr.bf16.mxu1 %v1092_v0  ;;  %v22_v58 = vld [vmem:[%s1326_s0 + $0x20] sm:$0xff]  ;;  %v23_v59 = vld [vmem:[%s1326_s0 + $0x28] sm:$0xff]  ;;  %v24_v60 = vld [vmem:[%s1326_s0 + $0x30] sm:$0xff] }
   0x5   :  { %1028 = vmatpush3.bf16.msra.mxu0 %v1025_v3  ;;  %938 = vmatprep.mubr.msk.f32.mxu0 %vm29_vm2, %v18_v7  ;;  %vm169_vm3 = vcmp.ge.s32.totalorder %v168_v11, 64  ;;  %vm170_vm4 = vcmp.lt.s32.totalorder %v168_v11, 96  ;;  %v25_v61 = vld [vmem:[%s1326_s0 + $0x38] sm:$0xff] }
   0x6   :  { %936 = vmatprep.subr.msk.mxu0 %vm54_vm1, %v28_v5  ;;  %vm171_vm5 = vmand %vm169_vm3, %vm170_vm4 }
   0x7   :  { %953 = vmatpush3.bf16.msra.mxu1 %v1145_v6  ;;  %v1169_v15 = vsel %vm171_vm5, 2.0, %v1095_v14 }
   0x8   :  { %958 = vmatprep.subr.bf16.mxu1 %v1092_v0  ;;  %v1173_v25 = vsub.f32 1.0, %v1169_v15 }
   0x9   :  { %937 = vmatpush3.msk.msra.mxu0 %vm54_vm1, %v28_v5 }
   0xa   :  { %939 = vmatmul.mubr.msk.f32.vlgmr.msra.gmra.mrb[0].mxu0 %vm29_vm2, %v19_v8  ;;  %966 = vmatprep.subr.bf16.mxu0 %v1092_v0 }
   0xb   :  { %955 = vmatmul.mubr.bf16.vlgmr.msra.gmra.mrb[0].mxu1 %v1094_v9  ;;  %967 = vmatpush3.bf16.msra.mxu0 %v1136_v4 }
   0xc   :  { %959 = vmatpush3.bf16.msra.mxu1 %v1136_v4  ;;  %962 = vmatprep.mubr.msk.bf16.mxu1 %vm1093_vm0, %v1092_v0 }
   0xd   :  { %960 = vmatprep.subr.bf16.mxu1 %v1092_v0  ;;  %968 = vmatprep.subr.bf16.mxu0 %v1092_v0 }
   0xe   :  { %941 = vmatprep.mubr.msk.f32.mxu0 %vm29_vm2, %v20_v56 }
   0xf   :  { %969 = vmatpush3.bf16.msra.mxu0 %v1145_v6 }
  0x10   :  { %961 = vmatpush3.bf16.msra.mxu1 %v1145_v6  ;;  %982 = vmatprep.subr.bf16.mxu0 %v1092_v0 }
  0x11   :  { %974 = vmatprep.subr.bf16.mxu1 %v1092_v0  ;;  %942 = vmatmul.mubr.msk.f32.gmra.mrb[2].mxu0 %vm29_vm2, %v21_v57 }
  0x12   :  { %944 = vmatprep.mubr.msk.f32.mxu0 %vm29_vm2, %v22_v58 }
  0x15   :  { %945 = vmatmul.mubr.msk.f32.gmra.mrb[4].mxu0 %vm29_vm2, %v23_v59 }
  0x16   :  { %947 = vmatprep.mubr.msk.f32.mxu0 %vm29_vm2, %v24_v60 }
  0x19   :  { %948 = vmatmul.mubr.msk.f32.gmra.mrb[6].mxu0 %vm29_vm2, %v25_v61 }
  0x1a   :  { %970 = vmatprep.mubr.msk.bf16.mxu0 %vm1093_vm0, %v1092_v0 }
  0xdd   :  { %v940_v12 = vpop.f32.mrb[0].mxu0 }
  0xde   :  { %v124_v13 = vpop.f32.mrb[1].mxu0  ;;  %v224_v16 = vpop.f32.mrb[0].mxu1 }
  0xdf   :  { %v230_v17 = vadd.f32 %v224_v16, %v124_v13  ;;  %v956_v18 = vpop.f32.mrb[1].mxu1 }
  0xe0   :  { %v227_v19 = vpop.f32.mrb[2].mxu1 }
  0xe1   :  { %v231_v20 = vmul.f32 %v230_v17, %v1169_v15  ;;  %v957_v21 = vpop.f32.mrb[3].mxu1 }
  0xe3   :  { %v875_v22 = vmul.f32 -1.442695, %v231_v20 }
  0xe4   :  { %v943_v3 = vpop.f32.mrb[2].mxu0 }
  0xe5   :  { %1044 = vpow2.f32 %v875_v22  ;;  %v134_v5 = vpop.f32.mrb[3].mxu0 }
  0xe8   :  { %v1221_v7 = vpop.f32.mrb[4].mxu0 }
  0xe9   :  { %v1223_v8 = vpop.f32.mrb[5].mxu0 }
  0xec   :  { %v1225_v9 = vpop.f32.mrb[6].mxu0 }
  0xed   :  { %v1227_v10 = vpop.f32.mrb[7].mxu0 }
  0xef   :  { %v1045_v23 = vpop.eup %1044 }
  0xf0   :  { %v235_v24 = vadd.f32 1.0, %v1045_v23 }
  0xf2   :  { %1046 = vrcp.f32 %v235_v24 }
  0xfc   :  { %v1047_v26 = vpop.eup %1046 }
  0xfd   :  { %v238_v27 = vmul.f32 %v1047_v26, %v1169_v15 }
  0xff   :  { %v239_v28 = vadd.f32 %v238_v27, %v1173_v25 }
 0x101   :  { %242 = vrot.lane.b32.xlu0 %v239_v28, %s1096_s2  ;;  %v240_v31 = vmul.f32 0.0, %v239_v28 }
 0x173   :  { %v243_v29 = vpop.permute.xlu0 %242 }
 0x174   :  { %v245_v30 = vmul.f32 %v243_v29, %v239_v28 }
 0x176   :  { %247 = vrot.lane.b32.xlu0 %v245_v30, %s1097_s28 }
 0x1e8   :  { %v248_v32 = vpop.permute.xlu0 %247 }
 0x1e9   :  { %v250_v33 = vadd.f32 %v248_v32, %v240_v31 }
 0x1eb   :  { %1048 = vtanh.f32 %v250_v33 }
 0x1f5   :  { %v1049_v34 = vpop.eup %1048 }
 0x1f6   :  { %253 = vrot.lane.b32.xlu1 %v1049_v34, %s1096_s2 }
 0x268   :  { %v254_v35 = vpop.permute.xlu1 %253 }
 0x269   :  { %v256_v36 = vmul.f32 %v254_v35, %v239_v28 }
 0x26b   :  { %v257_v37 = vpack.c.bf16 %v256_v36, %v256_v36 }
 0x26d   :  { %259 = vrot.lane.b32.xlu1 %v257_v37, %s1097_s28 }
 0x2df   :  { %v260_v38 = vpop.permute.xlu1 %259 }
 0x2e0   :  { %963 = vmatmul.mubr.msk.bf16.vlgmr.msra.gmra.mrb[4].mxu1 %vm186_vm6, %v260_v38 }
 0x2e1   :  { %975 = vmatpush3.bf16.msra.mxu1 %v1136_v4  ;;  %978 = vmatprep.mubr.msk.bf16.mxu1 %vm1093_vm0, %v1092_v0 }
 0x2e2   :  { %976 = vmatprep.subr.bf16.mxu1 %v1092_v0 }
 0x2e5   :  { %977 = vmatpush3.bf16.msra.mxu1 %v1145_v6 }
 0x2e6   :  { %990 = vmatprep.subr.bf16.mxu1 %v1092_v0 }
 0x3b3   :  { %v298_v39 = vpop.f32.mrb[4].mxu1 }
 0x3b4   :  { %v304_v40 = vadd.f32 %v940_v12, %v298_v39  ;;  %v964_v41 = vpop.f32.mrb[5].mxu1 }
 0x3b5   :  { %v301_v42 = vpop.f32.mrb[6].mxu1 }
 0x3b6   :  { %v305_v43 = vmul.f32 %v304_v40, %v1169_v15  ;;  %v965_v44 = vpop.f32.mrb[7].mxu1 }
 0x3b8   :  { %v877_v45 = vmul.f32 -1.442695, %v305_v43 }
 0x3ba   :  { %1050 = vpow2.f32 %v877_v45 }
 0x3c4   :  { %v1051_v46 = vpop.eup %1050 }
 0x3c5   :  { %v309_v47 = vadd.f32 1.0, %v1051_v46 }
 0x3c7   :  { %1052 = vrcp.f32 %v309_v47 }
 0x3d1   :  { %v1053_v48 = vpop.eup %1052 }
 0x3d2   :  { %v312_v49 = vmul.f32 %v1053_v48, %v1169_v15 }
 0x3d4   :  { %v313_v50 = vadd.f32 %v312_v49, %v1173_v25 }
 0x3d6   :  { %316 = vrot.lane.b32.xlu0 %v313_v50, %s1096_s2  ;;  %v314_v53 = vmul.f32 %v313_v50, %v250_v33 }
 0x448   :  { %v317_v51 = vpop.permute.xlu0 %316 }
 0x449   :  { %v319_v52 = vmul.f32 %v317_v51, %v313_v50 }
 0x44b   :  { %321 = vrot.lane.b32.xlu1 %v319_v52, %s1097_s28 }
 0x4bd   :  { %v322_v54 = vpop.permute.xlu1 %321 }
 0x4be   :  { %v324_v55 = vadd.f32 %v322_v54, %v314_v53 }
 0x4c0   :  { %1054 = vtanh.f32 %v324_v55 }
 0x4ca   :  { %v1055_v62 = vpop.eup %1054 }
 0x4cb   :  { %327 = vrot.lane.b32.xlu0 %v1055_v62, %s1096_s2 }
 0x53d   :  { %v328_v63 = vpop.permute.xlu0 %327 }
 0x53e   :  { %v330_v1 = vmul.f32 %v328_v63, %v313_v50 }
 0x540   :  { %v331_v2 = vpack.c.bf16 %v330_v1, %v330_v1 }
 0x542   :  { %333 = vrot.lane.b32.xlu1 %v331_v2, %s1097_s28 }
 0x5b4   :  { %v334_v11 = vpop.permute.xlu1 %333 }
 0x5b5   :  { %971 = vmatmul.mubr.msk.bf16.vlgmr.msra.gmra.mrb[8].mxu0 %vm186_vm6, %v334_v11 }
 0x5b6   :  { %983 = vmatpush3.bf16.msra.mxu0 %v1136_v4  ;;  %986 = vmatprep.mubr.msk.bf16.mxu0 %vm1093_vm0, %v1092_v0 }
 0x5b7   :  { %984 = vmatprep.subr.bf16.mxu0 %v1092_v0 }
 0x5ba   :  { %985 = vmatpush3.bf16.msra.mxu0 %v1145_v6 }
 0x5bb   :  { %998 = vmatprep.subr.bf16.mxu0 %v1092_v0 }
 0x688   :  { %v372_v12 = vpop.f32.mrb[8].mxu0 }
 0x689   :  { %v378_v13 = vadd.f32 %v372_v12, %v134_v5  ;;  %v972_v14 = vpop.f32.mrb[9].mxu0 }
 0x68a   :  { %v375_v16 = vpop.f32.mrb[10].mxu0 }
 0x68b   :  { %v379_v17 = vmul.f32 %v378_v13, %v1169_v15  ;;  %v973_v18 = vpop.f32.mrb[11].mxu0 }
 0x68d   :  { %v879_v19 = vmul.f32 -1.442695, %v379_v17 }
 0x68f   :  { %1056 = vpow2.f32 %v879_v19 }
 0x699   :  { %v1057_v20 = vpop.eup %1056 }
 0x69a   :  { %v383_v21 = vadd.f32 1.0, %v1057_v20 }
 0x69c   :  { %1058 = vrcp.f32 %v383_v21 }
 0x6a6   :  { %v1059_v22 = vpop.eup %1058 }
 0x6a7   :  { %v386_v23 = vmul.f32 %v1059_v22, %v1169_v15 }
 0x6a9   :  { %v387_v24 = vadd.f32 %v386_v23, %v1173_v25 }
 0x6ab   :  { %390 = vrot.lane.b32.xlu0 %v387_v24, %s1096_s2  ;;  %v388_v28 = vmul.f32 %v387_v24, %v324_v55 }
 0x71d   :  { %v391_v26 = vpop.permute.xlu0 %390 }
 0x71e   :  { %v393_v27 = vmul.f32 %v391_v26, %v387_v24 }
 0x720   :  { %395 = vrot.lane.b32.xlu1 %v393_v27, %s1097_s28 }
 0x792   :  { %v396_v29 = vpop.permute.xlu1 %395 }
 0x793   :  { %v398_v30 = vadd.f32 %v396_v29, %v388_v28 }
 0x795   :  { %1060 = vtanh.f32 %v398_v30 }
 0x79f   :  { %v1061_v31 = vpop.eup %1060 }
 0x7a0   :  { %401 = vrot.lane.b32.xlu0 %v1061_v31, %s1096_s2 }
 0x812   :  { %v402_v32 = vpop.permute.xlu0 %401 }
 0x813   :  { %v404_v33 = vmul.f32 %v402_v32, %v387_v24 }
 0x815   :  { %v405_v34 = vpack.c.bf16 %v404_v33, %v404_v33 }
 0x817   :  { %407 = vrot.lane.b32.xlu1 %v405_v34, %s1097_s28 }
 0x889   :  { %v408_v35 = vpop.permute.xlu1 %407 }
 0x88a   :  { %979 = vmatmul.mubr.msk.bf16.vlgmr.msra.gmra.mrb[8].mxu1 %vm186_vm6, %v408_v35 }
 0x88b   :  { %991 = vmatpush3.bf16.msra.mxu1 %v1136_v4  ;;  %994 = vmatprep.mubr.msk.bf16.mxu1 %vm1093_vm0, %v1092_v0 }
 0x88c   :  { %992 = vmatprep.subr.bf16.mxu1 %v1092_v0 }
 0x88f   :  { %993 = vmatpush3.bf16.msra.mxu1 %v1145_v6 }
 0x890   :  { %1006 = vmatprep.subr.bf16.mxu1 %v1092_v0 }
 0x95d   :  { %v446_v36 = vpop.f32.mrb[8].mxu1 }
 0x95e   :  { %v452_v37 = vadd.f32 %v943_v3, %v446_v36  ;;  %v980_v38 = vpop.f32.mrb[9].mxu1 }
 0x95f   :  { %v449_v39 = vpop.f32.mrb[10].mxu1 }
 0x960   :  { %v453_v40 = vmul.f32 %v452_v37, %v1169_v15  ;;  %v981_v41 = vpop.f32.mrb[11].mxu1 }
 0x962   :  { %v881_v42 = vmul.f32 -1.442695, %v453_v40 }
 0x964   :  { %1062 = vpow2.f32 %v881_v42 }
 0x96e   :  { %v1063_v43 = vpop.eup %1062 }
 0x96f   :  { %v457_v44 = vadd.f32 1.0, %v1063_v43 }
 0x971   :  { %1064 = vrcp.f32 %v457_v44 }
 0x97b   :  { %v1065_v45 = vpop.eup %1064 }
 0x97c   :  { %v460_v46 = vmul.f32 %v1065_v45, %v1169_v15 }
 0x97e   :  { %v461_v47 = vadd.f32 %v460_v46, %v1173_v25 }
 0x980   :  { %464 = vrot.lane.b32.xlu0 %v461_v47, %s1096_s2  ;;  %v462_v50 = vmul.f32 %v461_v47, %v398_v30 }
 0x9f2   :  { %v465_v48 = vpop.permute.xlu0 %464 }
 0x9f3   :  { %v467_v49 = vmul.f32 %v465_v48, %v461_v47 }
 0x9f5   :  { %469 = vrot.lane.b32.xlu1 %v467_v49, %s1097_s28 }
 0xa67   :  { %v470_v51 = vpop.permute.xlu1 %469 }
 0xa68   :  { %v472_v52 = vadd.f32 %v470_v51, %v462_v50 }
 0xa6a   :  { %1066 = vtanh.f32 %v472_v52 }
 0xa74   :  { %v1067_v53 = vpop.eup %1066 }
 0xa75   :  { %475 = vrot.lane.b32.xlu0 %v1067_v53, %s1096_s2 }
 0xae7   :  { %v476_v54 = vpop.permute.xlu0 %475 }
 0xae8   :  { %v478_v55 = vmul.f32 %v476_v54, %v461_v47 }
 0xaea   :  { %v479_v56 = vpack.c.bf16 %v478_v55, %v478_v55 }
 0xaec   :  { %481 = vrot.lane.b32.xlu1 %v479_v56, %s1097_s28 }
 0xb5e   :  { %v482_v57 = vpop.permute.xlu1 %481 }
 0xb5f   :  { %987 = vmatmul.mubr.msk.bf16.vlgmr.msra.gmra.mrb[12].mxu0 %vm186_vm6, %v482_v57 }
 0xb60   :  { %999 = vmatpush3.bf16.msra.mxu0 %v1136_v4  ;;  %1002 = vmatprep.mubr.msk.bf16.mxu0 %vm1093_vm0, %v1092_v0 }
 0xb61   :  { %1000 = vmatprep.subr.bf16.mxu0 %v1092_v0 }
 0xb64   :  { %1001 = vmatpush3.bf16.msra.mxu0 %v1145_v6 }
 0xc32   :  { %v520_v58 = vpop.f32.mrb[12].mxu0 }
 0xc33   :  { %v526_v59 = vadd.f32 %v520_v58, %v1223_v8  ;;  %v988_v60 = vpop.f32.mrb[13].mxu0 }
 0xc34   :  { %v523_v61 = vpop.f32.mrb[14].mxu0 }
 0xc35   :  { %v527_v62 = vmul.f32 %v526_v59, %v1169_v15  ;;  %v989_v63 = vpop.f32.mrb[15].mxu0 }
 0xc37   :  { %v883_v1 = vmul.f32 -1.442695, %v527_v62 }
 0xc39   :  { %1068 = vpow2.f32 %v883_v1 }
 0xc43   :  { %v1069_v2 = vpop.eup %1068 }
 0xc44   :  { %v531_v3 = vadd.f32 1.0, %v1069_v2 }
 0xc46   :  { %1070 = vrcp.f32 %v531_v3 }
 0xc50   :  { %v1071_v5 = vpop.eup %1070 }
 0xc51   :  { %v534_v11 = vmul.f32 %v1071_v5, %v1169_v15 }
 0xc53   :  { %v535_v12 = vadd.f32 %v534_v11, %v1173_v25 }
 0xc55   :  { %538 = vrot.lane.b32.xlu0 %v535_v12, %s1096_s2  ;;  %v536_v8 = vmul.f32 %v535_v12, %v472_v52 }
 0xcc7   :  { %v539_v13 = vpop.permute.xlu0 %538 }
 0xcc8   :  { %v541_v14 = vmul.f32 %v539_v13, %v535_v12 }
 0xcca   :  { %543 = vrot.lane.b32.xlu1 %v541_v14, %s1097_s28 }
 0xd3c   :  { %v544_v16 = vpop.permute.xlu1 %543 }
 0xd3d   :  { %v546_v17 = vadd.f32 %v544_v16, %v536_v8 }
 0xd3f   :  { %1072 = vtanh.f32 %v546_v17 }
 0xd49   :  { %v1073_v18 = vpop.eup %1072 }
 0xd4a   :  { %549 = vrot.lane.b32.xlu0 %v1073_v18, %s1096_s2 }
 0xdbc   :  { %v550_v19 = vpop.permute.xlu0 %549 }
 0xdbd   :  { %v552_v20 = vmul.f32 %v550_v19, %v535_v12 }
 0xdbf   :  { %v553_v21 = vpack.c.bf16 %v552_v20, %v552_v20 }
 0xdc1   :  { %555 = vrot.lane.b32.xlu1 %v553_v21, %s1097_s28 }
 0xe33   :  { %v556_v22 = vpop.permute.xlu1 %555 }
 0xe34   :  { %995 = vmatmul.mubr.msk.bf16.vlgmr.msra.gmra.mrb[12].mxu1 %vm186_vm6, %v556_v22  ;;  %v1098_v22 = vmov 0.0|0.0  }
 0xe35   :  { %1007 = vmatpush3.bf16.msra.mxu1 %v1136_v4  ;;  %1010 = vmatprep.mubr.msk.bf16.mxu1 %vm1093_vm0, %v1092_v0 }
 0xe36   :  { %1008 = vmatprep.subr.bf16.mxu1 %v1092_v0  ;;  %1029 = vmatprep.subr.bf16.mxu0 %v1098_v22 }
 0xe39   :  { %1009 = vmatpush3.bf16.msra.mxu1 %v1145_v6 }
 0xf07   :  { %v594_v23 = vpop.f32.mrb[12].mxu1 }
 0xf08   :  { %v600_v24 = vadd.f32 %v1221_v7, %v594_v23  ;;  %v996_v26 = vpop.f32.mrb[13].mxu1  ;;  %v775_v23 = vld [vmem:[%s1327_s3] sm:$0xff] }
 0xf09   :  { %v597_v27 = vpop.f32.mrb[14].mxu1  ;;  %v778_v26 = vld [vmem:[%s1327_s3 + $0x18] sm:$0xff] }
 0xf0a   :  { %v601_v28 = vmul.f32 %v600_v24, %v1169_v15  ;;  %v997_v29 = vpop.f32.mrb[15].mxu1 }
 0xf0c   :  { %v885_v30 = vmul.f32 -1.442695, %v601_v28 }
 0xf0e   :  { %1074 = vpow2.f32 %v885_v30 }
 0xf18   :  { %v1075_v31 = vpop.eup %1074 }
 0xf19   :  { %v605_v32 = vadd.f32 1.0, %v1075_v31 }
 0xf1b   :  { %1076 = vrcp.f32 %v605_v32  ;;  %v890_v32 = vld [vmem:[%s1327_s3 + $0x20] ss:$0 sm:$0xff] }
 0xf25   :  { %v1077_v4 = vpop.eup %1076 }
 0xf26   :  { %v608_v33 = vmul.f32 %v1077_v4, %v1169_v15 }
 0xf28   :  { %v609_v34 = vadd.f32 %v608_v33, %v1173_v25 }
 0xf2a   :  { %612 = vrot.lane.b32.xlu0 %v609_v34, %s1096_s2  ;;  %v610_v7 = vmul.f32 %v609_v34, %v546_v17 }
 0xf9c   :  { %v613_v6 = vpop.permute.xlu0 %612 }
 0xf9d   :  { %v615_v35 = vmul.f32 %v613_v6, %v609_v34 }
 0xf9f   :  { %617 = vrot.lane.b32.xlu1 %v615_v35, %s1097_s28 }
0x1011   :  { %v618_v36 = vpop.permute.xlu1 %617 }
0x1012   :  { %v620_v37 = vadd.f32 %v618_v36, %v610_v7 }
0x1014   :  { %1078 = vtanh.f32 %v620_v37 }
0x101e   :  { %v1079_v38 = vpop.eup %1078 }
0x101f   :  { %623 = vrot.lane.b32.xlu0 %v1079_v38, %s1096_s2 }
0x1091   :  { %v624_v39 = vpop.permute.xlu0 %623 }
0x1092   :  { %v626_v40 = vmul.f32 %v624_v39, %v609_v34 }
0x1094   :  { %v627_v41 = vpack.c.bf16 %v626_v40, %v626_v40 }
0x1096   :  { %629 = vrot.lane.b32.xlu1 %v627_v41, %s1097_s28 }
0x1108   :  { %v630_v42 = vpop.permute.xlu1 %629 }
0x1109   :  { %1003 = vmatmul.mubr.msk.bf16.vlgmr.msra.gmra.mrb[16].mxu0 %vm186_vm6, %v630_v42 }
0x110a   :  { %1022 = vmatprep.mubr.msk.f32.mxu0 %vm1093_vm0, %v1092_v0 }
0x11dc   :  { %v668_v43 = vpop.f32.mrb[16].mxu0 }
0x11dd   :  { %v674_v44 = vadd.f32 %v668_v43, %v1227_v10  ;;  %v1004_v45 = vpop.f32.mrb[17].mxu0 }
0x11de   :  { %v671_v46 = vpop.f32.mrb[18].mxu0 }
0x11df   :  { %v675_v47 = vmul.f32 %v674_v44, %v1169_v15  ;;  %v1005_v48 = vpop.f32.mrb[19].mxu0 }
0x11e1   :  { %v887_v49 = vmul.f32 -1.442695, %v675_v47 }
0x11e3   :  { %1080 = vpow2.f32 %v887_v49 }
0x11ed   :  { %v1081_v50 = vpop.eup %1080 }
0x11ee   :  { %v679_v51 = vadd.f32 1.0, %v1081_v50 }
0x11f0   :  { %1082 = vrcp.f32 %v679_v51 }
0x11fa   :  { %v1083_v52 = vpop.eup %1082 }
0x11fb   :  { %v682_v53 = vmul.f32 %v1083_v52, %v1169_v15 }
0x11fd   :  { %v683_v54 = vadd.f32 %v682_v53, %v1173_v25 }
0x11ff   :  { %686 = vrot.lane.b32.xlu0 %v683_v54, %s1096_s2  ;;  %v684_v10 = vmul.f32 %v683_v54, %v620_v37 }
0x1271   :  { %v687_v0 = vpop.permute.xlu0 %686 }
0x1272   :  { %v689_v55 = vmul.f32 %v687_v0, %v683_v54 }
0x1274   :  { %691 = vrot.lane.b32.xlu1 %v689_v55, %s1097_s28 }
0x12e6   :  { %v692_v56 = vpop.permute.xlu1 %691 }
0x12e7   :  { %v694_v57 = vadd.f32 %v692_v56, %v684_v10 }
0x12e9   :  { %1084 = vtanh.f32 %v694_v57 }
0x12f3   :  { %v1085_v58 = vpop.eup %1084 }
0x12f4   :  { %697 = vrot.lane.b32.xlu0 %v1085_v58, %s1096_s2 }
0x1366   :  { %v698_v59 = vpop.permute.xlu0 %697 }
0x1367   :  { %v700_v60 = vmul.f32 %v698_v59, %v683_v54 }
0x1369   :  { %v701_v61 = vpack.c.bf16 %v700_v60, %v700_v60 }
0x136b   :  { %703 = vrot.lane.b32.xlu1 %v701_v61, %s1097_s28 }
0x13dd   :  { %v704_v62 = vpop.permute.xlu1 %703 }
0x13de   :  { %1011 = vmatmul.mubr.msk.bf16.vlgmr.msra.gmra.mrb[16].mxu1 %vm186_vm6, %v704_v62 }
0x14b1   :  { %v742_v63 = vpop.f32.mrb[16].mxu1 }
0x14b2   :  { %v748_v1 = vadd.f32 %v1225_v9, %v742_v63  ;;  %v1012_v2 = vpop.f32.mrb[17].mxu1 }
0x14b3   :  { %v745_v3 = vpop.f32.mrb[18].mxu1 }
0x14b4   :  { %v749_v5 = vmul.f32 %v748_v1, %v1169_v15  ;;  %v1013_v11 = vpop.f32.mrb[19].mxu1 }
0x14b6   :  { %v889_v12 = vmul.f32 -1.442695, %v749_v5 }
0x14b8   :  { %1086 = vpow2.f32 %v889_v12 }
0x14c2   :  { %v1087_v13 = vpop.eup %1086 }
0x14c3   :  { %v753_v14 = vadd.f32 1.0, %v1087_v13 }
0x14c5   :  { %1088 = vrcp.f32 %v753_v14 }
0x14cf   :  { %v1089_v8 = vpop.eup %1088 }
0x14d0   :  { %v756_v16 = vmul.f32 %v1089_v8, %v1169_v15  ;;  %v776_v15 = vld [vmem:[%s1327_s3 + $0x8] sm:$0xff] }
0x14d1   :  { %v1030_v24 = vpack.c.bf16 %v776_v15, %v775_v23 }
0x14d2   :  { %v757_v17 = vadd.f32 %v756_v16, %v1173_v25  ;;  %v777_v25 = vld [vmem:[%s1327_s3 + $0x10] sm:$0xff] }
0x14d3   :  { %1031 = vmatpush3.bf16.msra.mxu0 %v1030_v24  ;;  %v1033_v27 = vpack.c.bf16 %v778_v26, %v777_v25 }
0x14d4   :  { %760 = vrot.lane.b32.xlu0 %v757_v17, %s1096_s2  ;;  %v758_v9 = vmul.f32 %v757_v17, %v694_v57  ;;  %1032 = vmatprep.subr.bf16.mxu0 %v1098_v22 }
0x14d7   :  { %1034 = vmatpush3.bf16.msra.mxu0 %v1033_v27 }
0x1546   :  { %v761_v18 = vpop.permute.xlu0 %760 }
0x1547   :  { %v763_v19 = vmul.f32 %v761_v18, %v757_v17 }
0x1549   :  { %765 = vrot.lane.b32.xlu1 %v763_v19, %s1097_s28 }
0x15bb   :  { %v766_v20 = vpop.permute.xlu1 %765 }
0x15bc   :  { %v768_v21 = vadd.f32 %v766_v20, %v758_v9 }
0x15be   :  { %1090 = vtanh.f32 %v768_v21 }
0x15c8   :  { %v1091_v28 = vpop.eup %1090 }
0x15c9   :  { %771 = vrot.lane.b32.xlu0 %v1091_v28, %s1096_s2 }
0x163b   :  { %v772_v29 = vpop.permute.xlu0 %771 }
0x163c   :  { %v774_v30 = vmul.f32 %v772_v29, %v757_v17 }
0x163e   :  { %785 = vrot.lane.b32.xlu1 %v774_v30, %s1097_s28 }
0x16b0   :  { %v786_v31 = vpop.permute.xlu1 %785 }
0x16b1   :  { %1023 = vmatmul.mubr.msk.f32.vlgmr.msra.gmra.mrb[20].mxu0 %vm186_vm6, %v786_v31 }
0x1784   :  { %v855_v4 = vpop.f32.mrb[20].mxu0 }
0x1785   :  { %v856_v33 = vadd.f32 %v890_v32, %v855_v4  ;;  %v1024_v34 = vpop.f32.mrb[21].mxu0 }
0x1787   :  { %859 = vst [vmem:[%s1328_s4] sm:$0xff] %v856_v33 }

</bundles_post_ra>
